<compile_context>
chip_gen: v5e
topology: v5e:2x2
jax: 0.10.0
libtpu: 0.0.40
codegen_flags: <defaults>
</compile_context>

<pallas_src>
import functools

import jax
import jax.numpy as jnp
from jax.experimental import pallas as pl
from jax.experimental.pallas import tpu as pltpu


# ----------------------------- small helpers ------------------------------

def _gelu_tanh(x):
    # TODO(synk): F.gelu defaults to exact erf; tanh approximation used here (diff ~1e-3).
    c = 0.7978845608028654  # sqrt(2/pi)
    return 0.5 * x * (1.0 + jnp.tanh(c * (x + 0.044715 * x * x * x)))


def _choose_hw_tile(hw, max_tile):
    """Lane tile for the flattened spatial axis: full extent if small, else the largest
    multiple of 128 <= max_tile that divides hw (so no padding/slicing is ever needed)."""
    if hw <= max_tile:
        return hw
    t = max_tile
    while t >= 128:
        if hw % t == 0:
            return t
        t -= 128
    return hw  # fallback: single full-extent block


def _choose_channel_tile(c, h, w, itemsize, budget=2 * 1024 * 1024):
    """Largest divisor of c whose (cc, H, W) block stays under the VMEM budget."""
    if c * h * w * itemsize <= budget:
        return c
    for cc in range(c - 1, 0, -1):
        if c % cc == 0 and cc * h * w * itemsize <= budget:
            return cc
    return 1


# ------------------------------- kernels -----------------------------------

def _ln_conv1x1_kernel(*refs, bias_free, compute_dtype):
    # Fused LayerNorm (over channels) + 1x1 conv.
    # x_ref: (1, C, T)  lanes = spatial, sublanes = channels
    # g_ref/b_ref: (C, 1), w_ref: (Cout, C), o_ref: (1, Cout, T)
    if bias_free:
        x_ref, g_ref, w_ref, o_ref = refs
        b_ref = None
    else:
        x_ref, g_ref, b_ref, w_ref, o_ref = refs
    x = x_ref[0].astype(jnp.float32)                        # (C, T)
    mu = jnp.mean(x, axis=0, keepdims=True)                 # (1, T)
    xc = x - mu
    var = jnp.mean(xc * xc, axis=0, keepdims=True)
    inv = jax.lax.rsqrt(var + 1e-5)
    gamma = g_ref[...].astype(jnp.float32)                  # (C, 1)
    if bias_free:
        y = x * inv * gamma
    else:
        y = xc * inv * gamma + b_ref[...].astype(jnp.float32)
    w = w_ref[...].astype(compute_dtype)                    # (Cout, C)
    o_ref[0] = jnp.dot(w, y.astype(compute_dtype),
                       preferred_element_type=jnp.float32).astype(o_ref.dtype)


def _dwconv3x3_kernel(x_ref, w_ref, o_ref):
    # Depthwise 3x3, padding=1 (zero halo built in-kernel, no host pad).
    # x_ref: (1, Cc, H, W), w_ref: (Cc, 3, 3), o_ref: (1, Cc, H, W)
    _, cc, h, w = o_ref.shape
    x = x_ref[0].astype(jnp.float32)                        # (Cc, H, W)
    wt = w_ref[...].astype(jnp.float32)                     # (Cc, 3, 3)
    zc = jnp.zeros((cc, h, 1), jnp.float32)
    xw = jnp.concatenate([zc, x, zc], axis=2)               # (Cc, H, W+2)
    zr = jnp.zeros((cc, 1, w + 2), jnp.float32)
    xp = jnp.concatenate([zr, xw, zr], axis=1)              # (Cc, H+2, W+2)
    acc = jnp.zeros((cc, h, w), jnp.float32)
    for dh in range(3):
        for dw in range(3):
            tap = xp[:, dh:dh + h, dw:dw + w]               # (Cc, H, W)
            acc = acc + tap * wt[:, dh:dh + 1, dw:dw + 1]   # per-channel scalar broadcast
    o_ref[0] = acc.astype(o_ref.dtype)


def _attn_stats_kernel(q_ref, k_ref, g_ref, qs_ref, ks_ref, *, num_heads, compute_dtype):
    # Pass 1 of the channel attention: streamed over HW tiles (grid axis 1 = reduction).
    # q_ref/k_ref: (1, heads, ch, T); outputs are output-resident accumulators:
    #   g_ref:  (1, heads, ch, ch)  unnormalized gram q @ k^T
    #   qs_ref: (1, heads, ch, 1)   sum over HW of q^2
    #   ks_ref: (1, heads, ch, 1)   sum over HW of k^2
    ti = pl.program_id(1)

    @pl.when(ti == 0)
    def _():
        g_ref[...] = jnp.zeros_like(g_ref)
        qs_ref[...] = jnp.zeros_like(qs_ref)
        ks_ref[...] = jnp.zeros_like(ks_ref)

    q = q_ref[0]                                            # (heads, ch, T)
    k = k_ref[0]
    qf = q.astype(jnp.float32)
    kf = k.astype(jnp.float32)
    qs_ref[0] += jnp.sum(qf * qf, axis=-1, keepdims=True)
    ks_ref[0] += jnp.sum(kf * kf, axis=-1, keepdims=True)
    qc = q.astype(compute_dtype)
    kc = k.astype(compute_dtype)
    for hh in range(num_heads):
        part = jax.lax.dot_general(qc[hh], kc[hh], (((1,), (1,)), ((), ())),
                                   preferred_element_type=jnp.float32)   # (ch, ch)
        g_ref[0, hh] += part


def _attn_apply_kernel(p_ref, v_ref, res_ref, w_ref, o_ref, *, num_heads, compute_dtype):
    # Pass 2: out = residual + W_proj @ concat_heads(p_h @ v_h), per HW tile.
    # p_ref: (1, heads, ch, ch), v_ref: (1, heads, ch, T), res_ref: (1, C, T), w_ref: (C, C)
    v = v_ref[0].astype(compute_dtype)                      # (heads, ch, T)
    p = p_ref[0].astype(compute_dtype)                      # (heads, ch, ch)
    outs = [jnp.dot(p[hh], v[hh], preferred_element_type=jnp.float32)
            for hh in range(num_heads)]
    attn = jnp.concatenate(outs, axis=0).astype(compute_dtype)            # (C, T)
    w = w_ref[...].astype(compute_dtype)                                   # (C, C)
    proj = jnp.dot(w, attn, preferred_element_type=jnp.float32)
    o_ref[0] = (res_ref[0].astype(jnp.float32) + proj).astype(o_ref.dtype)


def _gated_project_res_kernel(x1_ref, x2_ref, res_ref, w_ref, o_ref, *, compute_dtype):
    # FFN tail: gelu(x1) * x2 -> 1x1 conv -> + residual, fused.
    # x1_ref/x2_ref: (1, 1, Hf, T), res_ref: (1, C, T), w_ref: (C, Hf), o_ref: (1, C, T)
    x1 = x1_ref[0, 0].astype(jnp.float32)                   # (Hf, T)
    x2 = x2_ref[0, 0].astype(jnp.float32)
    g = (_gelu_tanh(x1) * x2).astype(compute_dtype)
    w = w_ref[...].astype(compute_dtype)
    proj = jnp.dot(w, g, preferred_element_type=jnp.float32)
    o_ref[0] = (res_ref[0].astype(jnp.float32) + proj).astype(o_ref.dtype)


# ------------------------------- wrappers -----------------------------------

def ln_conv1x1(x3, ln_w, ln_b, w_conv, *, bias_free, out_dtype, compute_dtype, max_tile):
    """Fused LayerNorm + 1x1 conv. x3: (B, C, HW), w_conv: (Cout, C) -> (B, Cout, HW)."""
    b, c, hw = x3.shape
    cout = w_conv.shape[0]
    tile = _choose_hw_tile(hw, max_tile)
    n_t = hw // tile
    in_specs = [pl.BlockSpec((1, c, tile), lambda bi, ti: (bi, 0, ti)),
                pl.BlockSpec((c, 1), lambda bi, ti: (0, 0))]
    args = [x3, ln_w.reshape(c, 1)]
    if not bias_free:
        in_specs.append(pl.BlockSpec((c, 1), lambda bi, ti: (0, 0)))
        args.append(ln_b.reshape(c, 1))
    in_specs.append(pl.BlockSpec((cout, c), lambda bi, ti: (0, 0)))
    args.append(w_conv)
    return pl.pallas_call(
        functools.partial(_ln_conv1x1_kernel, bias_free=bias_free, compute_dtype=compute_dtype),
        out_shape=jax.ShapeDtypeStruct((b, cout, hw), out_dtype),
        grid=(b, n_t),
        in_specs=in_specs,
        out_specs=pl.BlockSpec((1, cout, tile), lambda bi, ti: (bi, 0, ti)),
        compiler_params=pltpu.CompilerParams(dimension_semantics=("parallel", "parallel")),
    )(*args)


def dwconv3x3(x4, w, *, out_dtype, block_budget_bytes=2 * 1024 * 1024):
    """Depthwise 3x3 conv (padding=1), channel-tiled. x4: (B, C, H, W), w: (C, 3, 3)."""
    b, c, h, wd = x4.shape
    cc = _choose_channel_tile(c, h, wd, jnp.dtype(x4.dtype).itemsize, block_budget_bytes)
    return pl.pallas_call(
        _dwconv3x3_kernel,
        out_shape=jax.ShapeDtypeStruct((b, c, h, wd), out_dtype),
        grid=(b, c // cc),
        in_specs=[pl.BlockSpec((1, cc, h, wd), lambda bi, ci: (bi, ci, 0, 0)),
                  pl.BlockSpec((cc, 3, 3), lambda bi, ci: (ci, 0, 0))],
        out_specs=pl.BlockSpec((1, cc, h, wd), lambda bi, ci: (bi, ci, 0, 0)),
        compiler_params=pltpu.CompilerParams(dimension_semantics=("parallel", "parallel"),
                                             vmem_limit_bytes=48 * 1024 * 1024),
    )(x4, w)


def attention_apply(x3, qkv3, w_proj, temperature, *, num_heads, compute_dtype, max_tile):
    """Channel attention (streamed over HW) fused with project_out and the residual add.
    x3 (residual): (B, C, HW) f32, qkv3: (B, 3C, HW) -> (B, C, HW) f32."""
    b, c, hw = x3.shape
    ch = c // num_heads
    tile = _choose_hw_tile(hw, max_tile)
    n_t = hw // tile
    # (B, 3C, HW) -> (B, 3*heads, ch, HW): free reshape; q/k/v selected purely via block indices.
    qkv4 = qkv3.reshape(b, 3 * num_heads, ch, hw)

    gram, qs, ks = pl.pallas_call(
        functools.partial(_attn_stats_kernel, num_heads=num_heads, compute_dtype=compute_dtype),
        out_shape=(jax.ShapeDtypeStruct((b, num_heads, ch, ch), jnp.float32),
                   jax.ShapeDtypeStruct((b, num_heads, ch, 1), jnp.float32),
                   jax.ShapeDtypeStruct((b, num_heads, ch, 1), jnp.float32)),
        grid=(b, n_t),
        in_specs=[pl.BlockSpec((1, num_heads, ch, tile), lambda bi, ti: (bi, 0, 0, ti)),   # q
                  pl.BlockSpec((1, num_heads, ch, tile), lambda bi, ti: (bi, 1, 0, ti))],  # k
        out_specs=(pl.BlockSpec((1, num_heads, ch, ch), lambda bi, ti: (bi, 0, 0, 0)),
                   pl.BlockSpec((1, num_heads, ch, 1), lambda bi, ti: (bi, 0, 0, 0)),
                   pl.BlockSpec((1, num_heads, ch, 1), lambda bi, ti: (bi, 0, 0, 0))),
        compiler_params=pltpu.CompilerParams(dimension_semantics=("parallel", "arbitrary")),
    )(qkv4, qkv4)

    # Tiny (B, heads, ch, ch) tensor: l2-normalization, temperature and softmax in plain JAX.
    qn = jnp.maximum(jnp.sqrt(qs), 1e-12)                   # matches F.normalize eps
    kn = jnp.maximum(jnp.sqrt(ks), 1e-12)
    s = gram / (qn * jnp.swapaxes(kn, -1, -2)) * temperature[None, :, None, None]
    p = jax.nn.softmax(s, axis=-1)

    return pl.pallas_call(
        functools.partial(_attn_apply_kernel, num_heads=num_heads, compute_dtype=compute_dtype),
        out_shape=jax.ShapeDtypeStruct((b, c, hw), x3.dtype),
        grid=(b, n_t),
        in_specs=[pl.BlockSpec((1, num_heads, ch, ch), lambda bi, ti: (bi, 0, 0, 0)),      # p
                  pl.BlockSpec((1, num_heads, ch, tile), lambda bi, ti: (bi, 2, 0, ti)),   # v
                  pl.BlockSpec((1, c, tile), lambda bi, ti: (bi, 0, ti)),                  # residual
                  pl.BlockSpec((c, c), lambda bi, ti: (0, 0))],                            # w_proj
        out_specs=pl.BlockSpec((1, c, tile), lambda bi, ti: (bi, 0, ti)),
        compiler_params=pltpu.CompilerParams(dimension_semantics=("parallel", "parallel")),
    )(p, qkv4, x3, w_proj)


def gated_project_residual(x3, h12, w_out, *, compute_dtype, max_tile):
    """gelu(x1)*x2 -> 1x1 conv -> + residual (fused). x3: (B,C,HW), h12: (B,2*Hf,HW)."""
    b, c, hw = x3.shape
    hidden = w_out.shape[1]
    tile = _choose_hw_tile(hw, max_tile)
    n_t = hw // tile
    h12v = h12.reshape(b, 2, hidden, hw)                    # free reshape; x1/x2 via block index
    return pl.pallas_call(
        functools.partial(_gated_project_res_kernel, compute_dtype=compute_dtype),
        out_shape=jax.ShapeDtypeStruct((b, c, hw), x3.dtype),
        grid=(b, n_t),
        in_specs=[pl.BlockSpec((1, 1, hidden, tile), lambda bi, ti: (bi, 0, 0, ti)),
                  pl.BlockSpec((1, 1, hidden, tile), lambda bi, ti: (bi, 1, 0, ti)),
                  pl.BlockSpec((1, c, tile), lambda bi, ti: (bi, 0, ti)),
                  pl.BlockSpec((c, hidden), lambda bi, ti: (0, 0))],
        out_specs=pl.BlockSpec((1, c, tile), lambda bi, ti: (bi, 0, ti)),
        compiler_params=pltpu.CompilerParams(dimension_semantics=("parallel", "parallel")),
    )(h12v, h12v, x3, w_out)


def transformer_block_in_forward(x, params, num_heads, layer_norm_type="WithBias",
                                 compute_dtype=jnp.bfloat16, max_tile=1024):
    bias_free = (layer_norm_type == "BiasFree")
    b, c, h, w = x.shape
    hw = h * w
    x3 = x.reshape(b, c, hw)                                 # residual stream stays f32

    # --- attention branch ---
    qkv = ln_conv1x1(x3, params["ln1_w"], None if bias_free else params["ln1_b"],
                     params["w_qkv"], bias_free=bias_free, out_dtype=compute_dtype,
                     compute_dtype=compute_dtype, max_tile=max_tile)       # (B, 3C, HW)
    qkv = dwconv3x3(qkv.reshape(b, 3 * c, h, w), params["w_qkv_dw"],
                    out_dtype=compute_dtype).reshape(b, 3 * c, hw)
    x3 = attention_apply(x3, qkv, params["w_proj_out"], params["temperature"],
                         num_heads=num_heads, compute_dtype=compute_dtype,
                         max_tile=max_tile)                                # residual fused

    # TODO(synk): x = x + ResHWAM(x) (self.ffn2) omitted — ResHWAM definition not provided.

    # --- feed-forward branch ---
    hidden = params["w_out"].shape[1]
    h12 = ln_conv1x1(x3, params["ln2_w"], None if bias_free else params["ln2_b"],
                     params["w_in"], bias_free=bias_free, out_dtype=compute_dtype,
                     compute_dtype=compute_dtype, max_tile=max_tile)       # (B, 2*Hf, HW)
    h12 = dwconv3x3(h12.reshape(b, 2 * hidden, h, w), params["w_dw"],
                    out_dtype=compute_dtype).reshape(b, 2 * hidden, hw)
    x3 = gated_project_residual(x3, h12, params["w_out"],
                                compute_dtype=compute_dtype, max_tile=max_tile)
    return x3.reshape(b, c, h, w)


# -------------------------- pure-JAX reference ------------------------------

def _reference_forward(x, params, num_heads, layer_norm_type="WithBias"):
    hi = jax.lax.Precision.HIGHEST
    b, c, h, w = x.shape
    hw = h * w

    def ln(x4, wt, bs):
        x3 = jnp.transpose(x4, (0, 2, 3, 1)).reshape(b, hw, c)
        mu = jnp.mean(x3, -1, keepdims=True)
        var = jnp.mean((x3 - mu) ** 2, -1, keepdims=True)
        if layer_norm_type == "BiasFree":
            y = x3 / jnp.sqrt(var + 1e-5) * wt
        else:
            y = (x3 - mu) / jnp.sqrt(var + 1e-5) * wt + bs
        return jnp.transpose(y.reshape(b, h, w, c), (0, 3, 1, 2))

    def pconv(x4, wt):
        return jnp.einsum("oc,bchw->bohw", wt, x4, precision=hi)

    def dconv(x4, wt):
        xp = jnp.pad(x4, ((0, 0), (0, 0), (1, 1), (1, 1)))
        out = jnp.zeros_like(x4)
        for dh in range(3):
            for dw in range(3):
                out = out + xp[:, :, dh:dh + h, dw:dw + w] * wt[:, dh, dw][None, :, None, None]
        return out

    def attn(x4):
        qkv = dconv(pconv(x4, params["w_qkv"]), params["w_qkv_dw"])
        q, k, v = jnp.split(qkv, 3, axis=1)
        rs = lambda a: a.reshape(b, num_heads, c // num_heads, hw)
        q, k, v = rs(q), rs(k), rs(v)
        l2 = lambda a: a / jnp.maximum(jnp.sqrt(jnp.sum(a * a, -1, keepdims=True)), 1e-12)
        q, k = l2(q), l2(k)
        s = jnp.einsum("bhcx,bhdx->bhcd", q, k, precision=hi)
        s = s * params["temperature"][None, :, None, None]
        p = jax.nn.softmax(s, axis=-1)
        o = jnp.einsum("bhcd,bhdx->bhcx", p, v, precision=hi).reshape(b, c, h, w)
        return pconv(o, params["w_proj_out"])

    def ffn(x4):
        h12 = dconv(pconv(x4, params["w_in"]), params["w_dw"])
        hid = params["w_in"].shape[0] // 2
        x1, x2 = h12[:, :hid], h12[:, hid:]
        return pconv(_gelu_tanh(x1) * x2, params["w_out"])

    y = x + attn(ln(x, params["ln1_w"], params["ln1_b"]))
    y = y + ffn(ln(y, params["ln2_w"], params["ln2_b"]))
    return y


# --------------------------------- main --------------------------------------

if __name__ == "__main__":
    key = jax.random.PRNGKey(0)
    B, C, H, W = 2, 4, 16, 16
    num_heads = 2
    ffn_expansion_factor = 2.0
    hidden = int(C * ffn_expansion_factor)
    assert C % num_heads == 0

    keys = jax.random.split(key, 8)
    x = jax.random.normal(keys[0], (B, C, H, W), dtype=jnp.float32)

    params = {
        "ln1_w": jnp.ones((C,), jnp.float32), "ln1_b": jnp.zeros((C,), jnp.float32),
        "ln2_w": jnp.ones((C,), jnp.float32), "ln2_b": jnp.zeros((C,), jnp.float32),
        "temperature": jnp.ones((num_heads,), jnp.float32),
        "w_qkv": 0.2 * jax.random.normal(keys[1], (3 * C, C), jnp.float32),
        "w_qkv_dw": 0.2 * jax.random.normal(keys[2], (3 * C, 3, 3), jnp.float32),
        "w_proj_out": 0.2 * jax.random.normal(keys[3], (C, C), jnp.float32),
        "w_in": 0.2 * jax.random.normal(keys[4], (2 * hidden, C), jnp.float32),
        "w_dw": 0.2 * jax.random.normal(keys[5], (2 * hidden, 3, 3), jnp.float32),
        "w_out": 0.2 * jax.random.normal(keys[6], (C, hidden), jnp.float32),
    }

    ref = _reference_forward(x, params, num_heads, "WithBias")

    # Full-precision path (f32 MXU operands / f32 intermediates): tight check.
    y32 = jax.block_until_ready(
        transformer_block_in_forward(x, params, num_heads, "WithBias",
                                     compute_dtype=jnp.float32))
    err32 = float(jnp.max(jnp.abs(y32 - ref)))
    assert bool(jnp.allclose(y32, ref, atol=3e-3, rtol=3e-3)), f"f32 max abs err = {err32}"

    # bf16 MXU-operand / bf16-activation fast path: looser check.
    ybf = jax.block_until_ready(
        transformer_block_in_forward(x, params, num_heads, "WithBias",
                                     compute_dtype=jnp.bfloat16))
    errbf = float(jnp.max(jnp.abs(ybf - ref)))
    assert bool(jnp.allclose(ybf, ref, atol=3e-2, rtol=3e-2)), f"bf16 max abs err = {errbf}"

    print("KERNEL_OK")
</pallas_src>

<mosaic_0001>
module attributes {stable_mosaic.version = 11 : i64} {
  func.func @_ln_conv1x1_kernel(%arg0: i32, %arg1: i32, %arg2: memref<1x4x256xf32, #tpu.memory_space<vmem>>, %arg3: memref<4x1xf32, #tpu.memory_space<vmem>>, %arg4: memref<4x1xf32, #tpu.memory_space<vmem>>, %arg5: memref<12x4xf32, #tpu.memory_space<vmem>>, %arg6: memref<1x12x256xf32, #tpu.memory_space<vmem>>) attributes {dimension_semantics = [#tpu.dimension_semantics<parallel>, #tpu.dimension_semantics<parallel>], iteration_bounds = array<i64: 2, 1>, scalar_prefetch = 0 : i64, scratch_operands = 0 : i64, tpu.core_type = #tpu.core_type<tc>, window_params = [{transform_indices = @transform_0, window_bounds = array<i64: 1, 4, 256>}, {pipeline_mode = #tpu.pipeline_mode<synchronous>, transform_indices = @transform_1, window_bounds = array<i64: 4, 1>}, {pipeline_mode = #tpu.pipeline_mode<synchronous>, transform_indices = @transform_2, window_bounds = array<i64: 4, 1>}, {pipeline_mode = #tpu.pipeline_mode<synchronous>, transform_indices = @transform_3, window_bounds = array<i64: 12, 4>}, {transform_indices = @transform_4, window_bounds = array<i64: 1, 12, 256>}]} {
    %c0 = arith.constant 0 : index
    %c0_0 = arith.constant 0 : index
    %c0_1 = arith.constant 0 : index
    %0 = vector.load %arg2[%c0, %c0_0, %c0_1] : memref<1x4x256xf32, #tpu.memory_space<vmem>>, vector<1x4x256xf32>
    %1 = vector.shape_cast %0 : vector<1x4x256xf32> to vector<4x256xf32>
    %cst = arith.constant dense<0.000000e+00> : vector<256xf32>
    %2 = vector.multi_reduction <add>, %1, %cst [0] : vector<4x256xf32> to vector<256xf32>
    %3 = vector.shape_cast %2 : vector<256xf32> to vector<1x256xf32>
    %cst_2 = arith.constant 4.000000e+00 : f32
    %4 = vector.broadcast %cst_2 : f32 to vector<1x256xf32>
    %5 = arith.divf %3, %4 : vector<1x256xf32>
    %6 = vector.broadcast %5 : vector<1x256xf32> to vector<4x256xf32>
    %7 = arith.subf %1, %6 : vector<4x256xf32>
    %8 = arith.mulf %7, %7 : vector<4x256xf32>
    %cst_3 = arith.constant dense<0.000000e+00> : vector<256xf32>
    %9 = vector.multi_reduction <add>, %8, %cst_3 [0] : vector<4x256xf32> to vector<256xf32>
    %10 = vector.shape_cast %9 : vector<256xf32> to vector<1x256xf32>
    %cst_4 = arith.constant 4.000000e+00 : f32
    %11 = vector.broadcast %cst_4 : f32 to vector<1x256xf32>
    %12 = arith.divf %10, %11 : vector<1x256xf32>
    %cst_5 = arith.constant 9.99999974E-6 : f32
    %13 = vector.broadcast %cst_5 : f32 to vector<1x256xf32>
    %14 = arith.addf %12, %13 : vector<1x256xf32>
    %15 = math.rsqrt %14 : vector<1x256xf32>
    %c0_6 = arith.constant 0 : index
    %c0_7 = arith.constant 0 : index
    %16 = vector.load %arg3[%c0_6, %c0_7] : memref<4x1xf32, #tpu.memory_space<vmem>>, vector<4x1xf32>
    %17 = vector.broadcast %15 : vector<1x256xf32> to vector<4x256xf32>
    %18 = arith.mulf %7, %17 : vector<4x256xf32>
    %19 = vector.broadcast %16 : vector<4x1xf32> to vector<4x256xf32>
    %20 = arith.mulf %18, %19 : vector<4x256xf32>
    %c0_8 = arith.constant 0 : index
    %c0_9 = arith.constant 0 : index
    %21 = vector.load %arg4[%c0_8, %c0_9] : memref<4x1xf32, #tpu.memory_space<vmem>>, vector<4x1xf32>
    %22 = vector.broadcast %21 : vector<4x1xf32> to vector<4x256xf32>
    %23 = arith.addf %20, %22 : vector<4x256xf32>
    %c0_10 = arith.constant 0 : index
    %c0_11 = arith.constant 0 : index
    %24 = vector.load %arg5[%c0_10, %c0_11] : memref<12x4xf32, #tpu.memory_space<vmem>>, vector<12x4xf32>
    %cst_12 = arith.constant dense<0.000000e+00> : vector<12x256xf32>
    %25 = tpu.matmul %24, %23, %cst_12 {dimension_numbers = #tpu.dot_dimension_numbers<[1], [0], [0], [1], [0, 0, 1, 1], [], []>} : vector<12x4xf32>, vector<4x256xf32>, vector<12x256xf32> -> vector<12x256xf32>
    %c0_13 = arith.constant 0 : index
    %c0_14 = arith.constant 0 : index
    %c0_15 = arith.constant 0 : index
    %26 = vector.load %arg6[%c0_13, %c0_14, %c0_15] : memref<1x12x256xf32, #tpu.memory_space<vmem>>, vector<1x12x256xf32>
    %27 = vector.shape_cast %26 : vector<1x12x256xf32> to vector<12x256xf32>
    %28 = vector.shape_cast %25 : vector<12x256xf32> to vector<1x12x256xf32>
    tpu.vector_store %arg6[%c0_13, %c0_14, %c0_15], %28 {strides = array<i32>} : memref<1x12x256xf32, #tpu.memory_space<vmem>>, vector<1x12x256xf32>,
    return
  }
  func.func @transform_0(%arg0: i32, %arg1: i32) -> (i32, i32, i32) {
    %c0_i32 = arith.constant 0 : i32
    %c0_i32_0 = arith.constant 0 : i32
    return %arg0, %c0_i32, %arg1 : i32, i32, i32
  }
  func.func @transform_1(%arg0: i32, %arg1: i32) -> (i32, i32) {
    %c0_i32 = arith.constant 0 : i32
    %c0_i32_0 = arith.constant 0 : i32
    %c0_i32_1 = arith.constant 0 : i32
    return %c0_i32, %c0_i32_0 : i32, i32
  }
  func.func @transform_2(%arg0: i32, %arg1: i32) -> (i32, i32) {
    %c0_i32 = arith.constant 0 : i32
    %c0_i32_0 = arith.constant 0 : i32
    %c0_i32_1 = arith.constant 0 : i32
    return %c0_i32, %c0_i32_0 : i32, i32
  }
  func.func @transform_3(%arg0: i32, %arg1: i32) -> (i32, i32) {
    %c0_i32 = arith.constant 0 : i32
    %c0_i32_0 = arith.constant 0 : i32
    %c0_i32_1 = arith.constant 0 : i32
    return %c0_i32, %c0_i32_0 : i32, i32
  }
  func.func @transform_4(%arg0: i32, %arg1: i32) -> (i32, i32, i32) {
    %c0_i32 = arith.constant 0 : i32
    %c0_i32_0 = arith.constant 0 : i32
    return %arg0, %c0_i32, %arg1 : i32, i32, i32
  }
}

</mosaic_0001>

<bundles_post_ra>
// kernel: tpu_custom_call.1
= control target key start
LH: loop header
LB: loop body
LE: loop exit
PB: predicated region body
PF: predicated region fallthrough
CT: control target
= control target key end

     0   :  { %s608_s15 = smov 0   ;;  %s610_s16 = smov 0   ;;  %s667_s0 = inlined_call_operand.vmem [shape: f32[2,4,256], index: 0, kind: input, shape index: {}]   ;;  %s668_s1 = inlined_call_operand.vmem [shape: f32[4,1], index: 1, kind: input, shape index: {}]   ;;  %s669_s2 = inlined_call_operand.vmem [shape: f32[4,1], index: 2, kind: input, shape index: {}]   ;;  %s670_s3 = inlined_call_operand.vmem [shape: f32[12,4], index: 3, kind: input, shape index: {}]   ;;  %s671_s4 = inlined_call_operand.vmem [shape: f32[2,12,256], index: 4, kind: output, shape index: {}]  }
   0x1   :  { %s612_s17 = smov 0  }
   0x2 LB: > { %s26_s18 = sadd.s32 1, %s574_s16  ;;  %p505_p0 = scmp.ge.s32.totalorder %s578_s17, 1  ;;  %s578_s17 = sphi %s612_s17, %s14_s17   ;;  %s574_s16 = sphi %s610_s16, %s673_s16   ;;  %s570_s15 = sphi %s608_s15, %s672_s15  }
   0x3   : > { %p28_p1 = scmp.ge.s32.totalorder %s26_s18, 2  ;;  %p183_p2 = scmp.lt.s32.totalorder %s578_s17, 3 }
   0x5   : > { %s675_s18 = smov (%p28_p1, %s26_s18), 0  ;;  %p184_p3 = pnand %p505_p0, %p183_p2 }
   0x6   : > { %p218_p4 = scmp.lt.s32.totalorder (!%p184_p3), %s570_s15, 1 }
   0x7   : > { %187 = sbr.rel (%p184_p3) target bundleno = 285 (0x11d), region = 36 }
   0xc   : > { %v319_v0 = vld [vmem:[%s668_s1] sm:$0xf]  ;;  %v580_v1 = vmov 0   ;;  %s677_s15 = smov (!%p218_p4, %s570_s15), 1  ;;  %v581_v4 = vmov 4.0   ;;  %vm244_vm0 = vcmask 1043456  }
   0xd   : > { %549 = vset.pattern.permute.xlu0 %v580_v1  ;;  %s518_s21 = sshll.u32 %s677_s15, 3  ;;  %v336_v2 = vld [vmem:[%s669_s2] sm:$0xf]  ;;  %550 = vrcp.f32 %v581_v4  ;;  %vm353_vm8 = vcmask 31744   ;;  %s519_s5 = sshll.u32 %s677_s15, 5 }
   0xe   : > { %328 = vperm.xlu0 %549, %v319_v0   ;;  %s225_s24 = scalar_lea.vmem %s667_s0, %s518_s21  ;;  %s235_s8 = scalar_lea.vmem %s671_s4, %s519_s5 }
   0xf   : > { %v237_v3 = vld [vmem:[%s225_s24] sm:$0xff] }
  0x10   : > { %239 = vst [vmem:[#allocation1] ss:$2 sm:$0xff] %v237_v3 }
  0x13   : > { %v551_v10 = vpop.eup %550 }
  0x14   : > { %v260_v13 = vmul.f32 4.0, %v551_v10  ;;  %vm264_vm1 = vweird.f32 %v551_v10 }
  0x16   : > { %339 = vperm.xlu0 %549, %v336_v2   ;;  %v261_v16 = vsub.f32 1.0, %v260_v13 }
  0x17   : > { %v241_v5 = vld.sshfl [vmem:[#allocation1 + $0x8] sm:$0xff pattern:$0x75316420]  ;;  %v240_v7 = vld.sshfl [vmem:[#allocation1] sm:$0xff pattern:$0x75316420] }
  0x18   : > { %v252_v6 = vsel %vm244_vm0, %v241_v5, 0.0  ;;  %v245_v9 = vsel %vm244_vm0, %v240_v7, 0.0  ;;  %v262_v19 = vmul.f32 %v551_v10, %v261_v16 }
  0x19   : > { %v253_v8 = vrot.slane %v252_v6, 4  ;;  %v246_v11 = vrot.slane %v245_v9, 4 }
  0x1a   : > { %v263_v22 = vadd.f32 %v551_v10, %v262_v19 }
  0x1b   : > { %v254_v12 = vadd.f32 %v253_v8, %v252_v6  ;;  %v247_v14 = vadd.f32 %v246_v11, %v245_v9  ;;  %v582_v6 = vmov 839922192  }
  0x1c   : > { %v265_v25 = vsel %vm264_vm1, %v551_v10, %v263_v22  ;;  %v331_v7 = vunpack.c.l.s4 %v582_v6 }
  0x1d   : > { %v255_v15 = vrot.slane %v254_v12, 2  ;;  %v248_v17 = vrot.slane %v247_v14, 2 }
  0x1e   : > { %v332_v9 = vunpack.c.0.s8 %v331_v7 }
  0x1f   : > { %v256_v18 = vadd.f32 %v255_v15, %v254_v12  ;;  %v249_v20 = vadd.f32 %v248_v17, %v247_v14  ;;  %v348_v15 = vld [vmem:[%s670_s3 + $0x8] sm:$0xf] }
  0x21   : > { %v257_v21 = vrot.slane %v256_v18, 1  ;;  %v250_v23 = vrot.slane %v249_v20, 1 }
  0x23   : > { %v258_v24 = vadd.f32 %v257_v21, %v256_v18  ;;  %v251_v26 = vadd.f32 %v250_v23, %v249_v20  ;;  %v347_v18 = vld [vmem:[%s670_s3] sm:$0xff] }
  0x25   : > { %v267_v27 = vmul.f32 %v265_v25, %v258_v24  ;;  %v266_v28 = vmul.f32 %v265_v25, %v251_v26 }
  0x27   : > { %v270_v29 = vrot.slane %v267_v27, 4 }
  0x29   : > { %v271_v30 = vsel %vm244_vm0, %v266_v28, %v270_v29 }
  0x2a   : > { %v273_v31 = vsub.f32 %v237_v3, %v271_v30 }
  0x2c   : > { %v274_v32 = vmul.f32 %v273_v31, %v273_v31 }
  0x2e   : > { %276 = vst [vmem:[#allocation1] ss:$2 sm:$0xff] %v274_v32 }
  0x35   : > { %v278_v33 = vld.sshfl [vmem:[#allocation1 + $0x8] sm:$0xff pattern:$0x75316420]  ;;  %v277_v35 = vld.sshfl [vmem:[#allocation1] sm:$0xff pattern:$0x75316420] }
  0x36   : > { %v288_v34 = vsel %vm244_vm0, %v278_v33, 0.0  ;;  %v281_v37 = vsel %vm244_vm0, %v277_v35, 0.0 }
  0x37   : > { %v289_v36 = vrot.slane %v288_v34, 4  ;;  %v282_v38 = vrot.slane %v281_v37, 4 }
  0x39   : > { %v290_v39 = vadd.f32 %v289_v36, %v288_v34  ;;  %v283_v40 = vadd.f32 %v282_v38, %v281_v37 }
  0x3b   : > { %v291_v41 = vrot.slane %v290_v39, 2  ;;  %v284_v42 = vrot.slane %v283_v40, 2 }
  0x3d   : > { %v292_v43 = vadd.f32 %v291_v41, %v290_v39  ;;  %v285_v44 = vadd.f32 %v284_v42, %v283_v40 }
  0x3f   : > { %v293_v45 = vrot.slane %v292_v43, 1  ;;  %v286_v46 = vrot.slane %v285_v44, 1 }
  0x41   : > { %v294_v47 = vadd.f32 %v293_v45, %v292_v43  ;;  %v287_v48 = vadd.f32 %v286_v46, %v285_v44 }
  0x43   : > { %v296_v49 = vmul.f32 %v294_v47, %v265_v25  ;;  %v295_v50 = vmul.f32 %v287_v48, %v265_v25 }
  0x45   : > { %v298_v51 = vadd.f32 1e-05, %v296_v49  ;;  %v297_v52 = vadd.f32 1e-05, %v295_v50 }
  0x47   : > { %552 = vrsqrt.f32 %v298_v51  ;;  %vm315_vm2 = vweird.f32 %v298_v51  ;;  %vm305_vm5 = vweird.f32 %v297_v52 }
  0x48   : > { %554 = vrsqrt.f32 %v297_v52 }
  0x4d   : > { %v553_v53 = vpop.eup %552 }
  0x4e   : > { %v310_v54 = vmul.f32 %v553_v53, %v298_v51  ;;  %v555_v55 = vpop.eup %554  ;;  %vm316_vm3 = vweird.f32 %v553_v53 }
  0x4f   : > { %v300_v56 = vmul.f32 %v555_v55, %v297_v52  ;;  %vm317_vm4 = vmor %vm315_vm2, %vm316_vm3  ;;  %vm306_vm6 = vweird.f32 %v555_v55 }
  0x50   : > { %v311_v57 = vmul.f32 %v553_v53, %v310_v54  ;;  %vm307_vm7 = vmor %vm305_vm5, %vm306_vm6 }
  0x51   : > { %v301_v58 = vmul.f32 %v555_v55, %v300_v56 }
  0x52   : > { %v312_v59 = vmul.f32 0.5, %v311_v57 }
  0x53   : > { %v302_v60 = vmul.f32 0.5, %v301_v58 }
  0x54   : > { %v313_v61 = vsub.f32 1.5, %v312_v59 }
  0x55   : > { %v303_v62 = vsub.f32 1.5, %v302_v60 }
  0x56   : > { %v314_v63 = vmul.f32 %v553_v53, %v313_v61 }
  0x57   : > { %v304_v0 = vmul.f32 %v555_v55, %v303_v62 }
  0x58   : > { %v318_v1 = vsel %vm317_vm4, %v553_v53, %v314_v63 }
  0x59   : > { %v322_v2 = vrot.slane %v318_v1, 4  ;;  %v308_v3 = vsel %vm307_vm7, %v555_v55, %v304_v0 }
  0x5b   : > { %v323_v4 = vsel %vm244_vm0, %v308_v3, %v322_v2 }
  0x5c   : > { %v325_v5 = vmul.f32 %v323_v4, %v273_v31 }
  0x80   : > { %v329_v8 = vpop.permute.xlu0 %328 }
  0x81   : > { %v333_v10 = vperm.slane %v329_v8, %v332_v9 }
  0x83   : > { %v335_v12 = vmul.f32 %v333_v10, %v325_v5 }
  0x88   : > { %v340_v11 = vpop.permute.xlu0 %339 }
  0x89   : > { %v344_v13 = vperm.slane %v340_v11, %v332_v9 }
  0x8b   : > { %v346_v14 = vadd.f32 %v344_v13, %v335_v12 }
  0x8d   : > { %350 = vst [vmem:[#allocation1] ss:$2 sm:$0xff] %v346_v14 }
  0x94   : > { %v351_v16 = vld.sshfl [vmem:[#allocation1] sm:$0xff pattern:$0x75316420]  ;;  %v352_v17 = vld.sshfl [vmem:[#allocation1 + $0x8] sm:$0xff pattern:$0x75316420] }
  0x95   : > { %510 = vmatpush.msk.msra.mxu0 %vm244_vm0, %v351_v16  ;;  %520 = vmatpush.msk.msra.mxu2 %vm244_vm0, %v351_v16 }
  0x96   : > { %513 = vmatpush.msk.msra.mxu1 %vm244_vm0, %v352_v17  ;;  %521 = vmatpush.msk.msra.mxu3 %vm244_vm0, %v352_v17 }
  0x97   : > { %512 = vmatmul.msk.f32.vlgmr.msra.gmra.mxu2 %vm353_vm8, %v348_v15  ;;  %515 = vmatmul.msk.f32.vlgmr.msra.gmra.mxu3 %vm353_vm8, %v348_v15 }
  0x98   : > { %511 = vmatmul.msk.f32.vlgmr.msra.gmra.mxu0 %vm353_vm8, %v347_v18  ;;  %514 = vmatmul.msk.f32.vlgmr.msra.gmra.mxu1 %vm353_vm8, %v347_v18 }
 0x115   : > { %v381_v19 = vpop.f32.mrf.mxu0  ;;  %v404_v20 = vpop.f32.mrf.mxu1 }
 0x116   : > { %410 = vst [vmem:[%s235_s8] sm:$0xff] %v381_v19 }
 0x117   : > { %411 = vst [vmem:[%s235_s8 + $0x8] sm:$0xff] %v404_v20 }
 0x11a   : > { %v384_v21 = vpop.f32.mrf.mxu2  ;;  %v407_v22 = vpop.f32.mrf.mxu3 }
 0x11b   : > { %412 = vst [vmem:[%s235_s8 + $0x10] sm:$0xf] %v384_v21 }
 0x11c   : > { %413 = vst [vmem:[%s235_s8 + $0x18] sm:$0xf] %v407_v22 }
 0x11d PF: > { %s14_s17 = sadd.s32 1, %s578_s17   ;;  %s672_s15 = smov %s574_s16 }
 0x11e   : > { %p11_p5 = scmp.ge.s32.totalorder %s14_s17, 4   ;;  %s673_s16 = smov %s675_s18 }
 0x120   :  { %13 = sbr.rel (!%p11_p5) target bundleno = 2 (0x2), region = 66 }

</bundles_post_ra>
